<compile_context>
chip_gen: v5e
topology: v5e:2x2
jax: 0.10.0
libtpu: 0.0.40
codegen_flags: <defaults>
</compile_context>

<pallas_src>
import math

import jax
import jax.numpy as jnp
from jax import lax
from jax.experimental import pallas as pl
from jax.experimental.pallas import tpu as pltpu


# ---------------------------------------------------------------------------
# Kernel
# ---------------------------------------------------------------------------

def _make_kernel(*, tq, seq_len, wp_resident, has_mask, exp_dtype, precision=None):
    """Build the attention kernel for one (batch, head-group, query-tile) step."""

    def kernel(q_ref, k_ref, v_ref, wp_ref, *rest):
        if has_mask:
            mask_ref, o_ref = rest
        else:
            (o_ref,) = rest

        q = q_ref[...]            # (hh, tq, D)
        k = k_ref[...]            # (hh, L,  D)
        v = v_ref[...]            # (hh, L,  D)

        # Wp rows for this query tile.  When Wp is fully resident (fetched once
        # for the whole grid) slice the rows we need; otherwise the BlockSpec
        # already delivered the (tq, L) row tile.
        if wp_resident and tq < seq_len:
            off = pl.multiple_of(pl.program_id(2) * tq, tq)
            wp = wp_ref[pl.ds(off, tq), :]
        else:
            wp = wp_ref[...]
        wp = wp.astype(jnp.float32)   # stored compact (bf16); upcast in-kernel

        # score = (q @ k^T) * (Wp / sqrt(D)).  Contraction on the last dims so
        # no explicit transpose of k is materialized; f32 accumulation on MXU.
        score = lax.dot_general(
            q, k,
            dimension_numbers=(((2,), (2,)), ((0,), (0,))),
            preferred_element_type=jnp.float32,
            precision=precision)
        score = score * wp[None]

        if has_mask:
            m = mask_ref[...]
            if m.ndim == 2:           # per-batch mask, broadcast over heads here
                m = m[None]
            score = jnp.where(m == 0, jnp.float32(-10000.0), score)

        # Numerically stable softmax.  Normalization happens AFTER the PV
        # matmul (hh*tq*D multiplies instead of hh*tq*L) with an EXACT
        # reciprocal (only tq*1 elements per head -> negligible cost).
        row_max = jnp.max(score, axis=-1, keepdims=True)
        e = jnp.exp((score - row_max).astype(exp_dtype))        # bf16 EUP on v6e/v7x
        denom = jnp.sum(e.astype(jnp.float32), axis=-1, keepdims=True)

        pv = lax.dot_general(
            e.astype(v.dtype), v,
            dimension_numbers=(((2,), (1,)), ((0,), (0,))),
            preferred_element_type=jnp.float32,
            precision=precision)
        out = pv * pl.reciprocal(denom)                          # exact reciprocal
        o_ref[...] = out.astype(o_ref.dtype)

    return kernel


# ---------------------------------------------------------------------------
# Sizing heuristics (generation-aware)
# ---------------------------------------------------------------------------

def _vmem_capacity_bytes():
    """VMEM per TensorCore: 128 MiB on v5e/v6e, 64 MiB on v7x."""
    try:
        return int(pltpu.get_tpu_info().vmem_capacity_bytes)
    except Exception:
        return 64 << 20   # conservative fallback (v7x size)


def _has_bf16_eup():
    """bf16 EUP/VPU exists on v6e and newer (not v2-v5)."""
    try:
        kind = jax.devices()[0].device_kind.lower()
    except Exception:
        return False
    return not any(tag in kind for tag in ("v2", "v3", "v4", "v5"))


def _pick_tq(L, budget):
    """Query tile: full L for small/medium L, a multiple-of-32 divisor otherwise."""
    if L <= 512:
        return L
    for cand in (512, 256, 128, 64, 32):
        if L % cand == 0 and 3 * cand * L * 4 <= budget:
            return cand
    # TODO(synk): add a key-axis-tiled (flash-style online-softmax) path and pad
    # awkward L instead of materializing full (L,) score rows for very large L.
    return L


def _pick_hh(B, H, L, D, tq, itemsize, mask_per_head, budget):
    """Heads per grid step: largest divisor of H whose working set fits budget."""
    best = 1
    for hh in range(1, H + 1):
        if H % hh:
            continue
        per = hh * (3 * tq * L * 4             # score / exp / pv f32 temporaries
                    + 2 * L * D * itemsize     # k, v tiles
                    + 2 * tq * D * itemsize)   # q, out tiles
        per += (hh if mask_per_head else 1) * tq * L   # int8 mask tile
        if per <= budget:
            best = hh
    # v7x megacore: keep >= 2 steps on the parallel (batch * head-group) axes.
    while B * (H // best) < 2 and best > 1:
        best = max(d for d in range(1, best) if H % d == 0)
    return best


def _vmem_limit_bytes(hh, tq, L, D, itemsize, wp_block_bytes, mask_block_bytes, cap):
    io = (2 * hh * tq * D * itemsize          # q + out blocks
          + 2 * hh * L * D * itemsize         # k + v blocks
          + mask_block_bytes)
    io *= 2                                   # double buffering
    io += 2 * wp_block_bytes                  # Wp (conservatively double-counted)
    scratch = 3 * hh * tq * L * 4 + hh * tq * D * 4
    total = int((io + scratch) * 1.25) + (2 << 20)
    # Leave headroom below physical VMEM: ~51 MiB on v7x, ~102 MiB on v5e/v6e.
    return max(8 << 20, min(total, int(cap * 0.8)))


# ---------------------------------------------------------------------------
# Wrapper
# ---------------------------------------------------------------------------

def position_aware_attention_scaling(q, k, v, wp, mask=None, *,
                                     wp_dtype=jnp.bfloat16,
                                     matmul_precision=None):
    """Forward pass of PositionAwareAttentionScaling.

    q, k, v : (B, H, L, D)
    wp      : (S, S) with S >= L (learnable Wp at max_seq_length; sliced to L)
    mask    : None, or anything broadcastable to (B, H, L, L); entries == 0 are
              filled with -10000 before the softmax.
    matmul_precision: pass jax.lax.Precision.HIGHEST for exact-f32 matmuls.
    """
    B, H, L, D = q.shape
    assert k.shape == (B, H, L, D) and v.shape == (B, H, L, D)
    assert wp.shape[0] >= L and wp.shape[1] >= L, "Wp smaller than sequence length"

    # Fold 1/sqrt(d_tensor) into Wp once on the host; store it compactly (bf16)
    # and upcast inside the kernel before the f32 multiply.
    wp_scaled = (wp[:L, :L].astype(jnp.float32)
                 * jnp.float32(1.0 / math.sqrt(D))).astype(wp_dtype)
    wp_itemsize = jnp.dtype(wp_dtype).itemsize

    itemsize = jnp.dtype(q.dtype).itemsize
    cap = _vmem_capacity_bytes()
    budget = cap // 3

    # --- mask canonicalization: never broadcast over the head axis in HBM ----
    has_mask = mask is not None
    mask_per_head = False
    mask_arr = None
    if has_mask:
        m = (jnp.asarray(mask) != 0).astype(jnp.int8)
        while m.ndim < 4:
            m = m[None]
        mb, mh = int(m.shape[0]), int(m.shape[1])
        m = jnp.broadcast_to(m, (mb, mh, L, L))      # only over the (L, L) dims
        mask_per_head = mh != 1
        if not mask_per_head:
            m = m.reshape(mb, L, L)                  # compact per-batch int8 mask
        mask_arr = m

    tq = _pick_tq(L, budget)
    hh = _pick_hh(B, H, L, D, tq, itemsize, mask_per_head, budget)
    HG, QG = H // hh, L // tq
    grid = (B, HG, QG)

    # Wp stays fully resident in VMEM (fetched exactly once: constant index_map)
    # whenever it fits; otherwise fall back to streaming (tq, L) row tiles.
    wp_resident = 2 * L * L * wp_itemsize <= budget // 2
    if wp_resident:
        wp_spec = pl.BlockSpec((L, L), lambda b, hg, qi: (0, 0))
        wp_block_bytes = L * L * wp_itemsize
    else:
        wp_spec = pl.BlockSpec((tq, L), lambda b, hg, qi: (qi, 0))
        wp_block_bytes = tq * L * wp_itemsize

    in_specs = [
        pl.BlockSpec((None, hh, tq, D), lambda b, hg, qi: (b, hg, qi, 0)),  # q
        pl.BlockSpec((None, hh, L, D), lambda b, hg, qi: (b, hg, 0, 0)),    # k (resident across qi)
        pl.BlockSpec((None, hh, L, D), lambda b, hg, qi: (b, hg, 0, 0)),    # v (resident across qi)
        wp_spec,                                                            # Wp (bf16, resident)
    ]
    args = [q, k, v, wp_scaled]

    mask_block_bytes = 0
    if has_mask:
        batched = mask_arr.shape[0] > 1
        if mask_per_head:
            mask_spec = (pl.BlockSpec((None, hh, tq, L), lambda b, hg, qi: (b, hg, qi, 0))
                         if batched else
                         pl.BlockSpec((None, hh, tq, L), lambda b, hg, qi: (0, hg, qi, 0)))
            mask_block_bytes = hh * tq * L
        else:
            mask_spec = (pl.BlockSpec((None, tq, L), lambda b, hg, qi: (b, qi, 0))
                         if batched else
                         pl.BlockSpec((None, tq, L), lambda b, hg, qi: (0, qi, 0)))
            mask_block_bytes = tq * L
        in_specs.append(mask_spec)
        args.append(mask_arr)

    # TODO(synk): for D < 128 the output store is only D/128 lane-dense; folding
    # several heads into a (tq, hh*D) output slab would need a layout transpose
    # outside the kernel and is left for a follow-up.
    out_spec = pl.BlockSpec((None, hh, tq, D), lambda b, hg, qi: (b, hg, qi, 0))

    exp_dtype = (jnp.bfloat16
                 if (q.dtype == jnp.bfloat16 and _has_bf16_eup())
                 else jnp.float32)
    kernel = _make_kernel(tq=tq, seq_len=L, wp_resident=wp_resident,
                          has_mask=has_mask, exp_dtype=exp_dtype,
                          precision=matmul_precision)

    cost = pl.CostEstimate(
        flops=4 * B * H * L * L * D,                    # QK^T + PV
        transcendentals=B * H * L * L,                  # exp over the score matrix
        bytes_accessed=(4 * B * H * L * D * itemsize    # q, k, v, out
                        + L * L * wp_itemsize           # Wp (fetched once)
                        + (int(mask_arr.size) if has_mask else 0)))

    out = pl.pallas_call(
        kernel,
        out_shape=jax.ShapeDtypeStruct((B, H, L, D), q.dtype),
        grid_spec=pltpu.PrefetchScalarGridSpec(
            num_scalar_prefetch=0,
            grid=grid,
            in_specs=in_specs,
            out_specs=out_spec,
        ),
        compiler_params=pltpu.CompilerParams(
            # batch/head-group axes shard across TensorCores (v7x megacore);
            # the query axis is the inner sequential loop so k/v stay resident.
            dimension_semantics=("parallel", "parallel", "arbitrary"),
            vmem_limit_bytes=_vmem_limit_bytes(
                hh, tq, L, D, itemsize, wp_block_bytes, mask_block_bytes, cap),
        ),
        cost_estimate=cost,
    )(*args)
    return out


# ---------------------------------------------------------------------------
# Reference + self-test
# ---------------------------------------------------------------------------

def _reference(q, k, v, wp, mask=None):
    d = q.shape[-1]
    L = q.shape[2]
    score = jnp.einsum("bhld,bhmd->bhlm", q.astype(jnp.float32),
                       k.astype(jnp.float32))
    score = score * wp.astype(jnp.float32)[:L, :L] / math.sqrt(d)
    if mask is not None:
        score = jnp.where(mask == 0, -10000.0, score)
    attn = jax.nn.softmax(score, axis=-1)
    return jnp.einsum("bhlm,bhmd->bhld", attn, v.astype(jnp.float32))


if __name__ == "__main__":
    B, H, L, D = 2, 2, 8, 32           # seq length == max_seq_length == 8
    key = jax.random.PRNGKey(0)
    kq, kk, kv = jax.random.split(key, 3)
    q = jax.random.normal(kq, (B, H, L, D), dtype=jnp.float32)
    k = jax.random.normal(kk, (B, H, L, D), dtype=jnp.float32)
    v = jax.random.normal(kv, (B, H, L, D), dtype=jnp.float32)

    wp = jnp.ones((L, L), dtype=jnp.float32)   # wp_init='ones'
    ref = _reference(q, k, v, wp, mask=None)

    # 1) mask=None fast path (no mask DMA at all).
    out = jax.block_until_ready(position_aware_attention_scaling(q, k, v, wp))
    assert jnp.allclose(out, ref, atol=2e-2, rtol=2e-2), "mismatch (no mask)"

    # 2) per-batch causal mask (B, 1, L, L): never broadcast over heads in HBM.
    causal = jnp.tril(jnp.ones((L, L), dtype=jnp.int32))
    mask = jnp.broadcast_to(causal, (B, 1, L, L))
    out_m = jax.block_until_ready(position_aware_attention_scaling(q, k, v, wp, mask))
    ref_m = _reference(q, k, v, wp, jnp.broadcast_to(mask, (B, H, L, L)))
    assert jnp.allclose(out_m, ref_m, atol=2e-2, rtol=2e-2), "mismatch (per-batch mask)"

    # 2b) fully materialized per-head mask exercises the (B, H, L, L) branch.
    mask_full = jnp.broadcast_to(causal, (B, H, L, L))
    out_mf = jax.block_until_ready(position_aware_attention_scaling(q, k, v, wp, mask_full))
    assert jnp.allclose(out_mf, ref_m, atol=2e-2, rtol=2e-2), "mismatch (per-head mask)"

    # 3) bf16 inputs: bf16 MXU operands (+ bf16 exp on v6e/v7x), f32 accumulation.
    out_bf = jax.block_until_ready(position_aware_attention_scaling(
        q.astype(jnp.bfloat16), k.astype(jnp.bfloat16), v.astype(jnp.bfloat16), wp))
    assert jnp.allclose(out_bf.astype(jnp.float32), ref, atol=6e-2, rtol=6e-2), \
        "mismatch (bf16)"

    # 4) Wp allocated at max_seq_length > L is sliced (not rejected).
    wp_big = jnp.ones((16, 16), dtype=jnp.float32)
    out_big = jax.block_until_ready(position_aware_attention_scaling(q, k, v, wp_big))
    assert jnp.allclose(out_big, ref, atol=2e-2, rtol=2e-2), "mismatch (sliced Wp)"

    print("KERNEL_OK")
</pallas_src>

<mosaic_0001>
module attributes {stable_mosaic.version = 11 : i64} {
  func.func @kernel(%arg0: i32, %arg1: i32, %arg2: i32, %arg3: memref<1x2x8x32xf32, #tpu.memory_space<vmem>>, %arg4: memref<1x2x8x32xf32, #tpu.memory_space<vmem>>, %arg5: memref<1x2x8x32xf32, #tpu.memory_space<vmem>>, %arg6: memref<8x8xbf16, #tpu.memory_space<vmem>>, %arg7: memref<1x2x8x32xf32, #tpu.memory_space<vmem>>) attributes {dimension_semantics = [#tpu.dimension_semantics<parallel>, #tpu.dimension_semantics<parallel>, #tpu.dimension_semantics<arbitrary>], iteration_bounds = array<i64: 2, 1, 1>, scalar_prefetch = 0 : i64, scratch_operands = 0 : i64, tpu.core_type = #tpu.core_type<tc>, window_params = [{transform_indices = @transform_0, window_bounds = array<i64: 1, 2, 8, 32>}, {transform_indices = @transform_1, window_bounds = array<i64: 1, 2, 8, 32>}, {transform_indices = @transform_2, window_bounds = array<i64: 1, 2, 8, 32>}, {pipeline_mode = #tpu.pipeline_mode<synchronous>, transform_indices = @transform_3, window_bounds = array<i64: 8, 8>}, {transform_indices = @transform_4, window_bounds = array<i64: 1, 2, 8, 32>}]} {
    %c0 = arith.constant 0 : index
    %c0_0 = arith.constant 0 : index
    %c0_1 = arith.constant 0 : index
    %c0_2 = arith.constant 0 : index
    %0 = vector.load %arg3[%c0, %c0_0, %c0_1, %c0_2] : memref<1x2x8x32xf32, #tpu.memory_space<vmem>>, vector<1x2x8x32xf32>
    %1 = vector.shape_cast %0 : vector<1x2x8x32xf32> to vector<2x8x32xf32>
    %c0_3 = arith.constant 0 : index
    %c0_4 = arith.constant 0 : index
    %c0_5 = arith.constant 0 : index
    %c0_6 = arith.constant 0 : index
    %2 = vector.load %arg4[%c0_3, %c0_4, %c0_5, %c0_6] : memref<1x2x8x32xf32, #tpu.memory_space<vmem>>, vector<1x2x8x32xf32>
    %3 = vector.shape_cast %2 : vector<1x2x8x32xf32> to vector<2x8x32xf32>
    %c0_7 = arith.constant 0 : index
    %c0_8 = arith.constant 0 : index
    %c0_9 = arith.constant 0 : index
    %c0_10 = arith.constant 0 : index
    %4 = vector.load %arg5[%c0_7, %c0_8, %c0_9, %c0_10] : memref<1x2x8x32xf32, #tpu.memory_space<vmem>>, vector<1x2x8x32xf32>
    %5 = vector.shape_cast %4 : vector<1x2x8x32xf32> to vector<2x8x32xf32>
    %c0_11 = arith.constant 0 : index
    %c0_12 = arith.constant 0 : index
    %6 = vector.load %arg6[%c0_11, %c0_12] : memref<8x8xbf16, #tpu.memory_space<vmem>>, vector<8x8xbf16>
    %7 = arith.extf %6 : vector<8x8xbf16> to vector<8x8xf32>
    %cst = arith.constant dense<0.000000e+00> : vector<2x8x8xf32>
    %8 = tpu.matmul %1, %3, %cst {dimension_numbers = #tpu.dot_dimension_numbers<[2], [2], [1], [1], [0, 0, 0, 1, 1, 1], [0], [0]>} : vector<2x8x32xf32>, vector<2x8x32xf32>, vector<2x8x8xf32> -> vector<2x8x8xf32>
    %9 = vector.shape_cast %7 : vector<8x8xf32> to vector<1x8x8xf32>
    %10 = vector.broadcast %9 : vector<1x8x8xf32> to vector<2x8x8xf32>
    %11 = arith.mulf %8, %10 : vector<2x8x8xf32>
    %cst_13 = arith.constant dense<0xFF800000> : vector<2x8xf32>
    %12 = vector.multi_reduction <maximumf>, %11, %cst_13 [2] : vector<2x8x8xf32> to vector<2x8xf32>
    %13 = vector.shape_cast %12 : vector<2x8xf32> to vector<2x8x1xf32>
    %14 = vector.broadcast %13 : vector<2x8x1xf32> to vector<2x8x8xf32>
    %15 = arith.subf %11, %14 : vector<2x8x8xf32>
    %16 = math.exp %15 : vector<2x8x8xf32>
    %cst_14 = arith.constant dense<0.000000e+00> : vector<2x8xf32>
    %17 = vector.multi_reduction <add>, %16, %cst_14 [2] : vector<2x8x8xf32> to vector<2x8xf32>
    %18 = vector.shape_cast %17 : vector<2x8xf32> to vector<2x8x1xf32>
    %cst_15 = arith.constant dense<0.000000e+00> : vector<2x8x32xf32>
    %19 = tpu.matmul %16, %5, %cst_15 {dimension_numbers = #tpu.dot_dimension_numbers<[2], [1], [1], [2], [0, 0, 0, 1, 1, 2], [0], [0]>} : vector<2x8x8xf32>, vector<2x8x32xf32>, vector<2x8x32xf32> -> vector<2x8x32xf32>
    %20 = tpu.reciprocal %18 : vector<2x8x1xf32> -> vector<2x8x1xf32>
    %21 = vector.broadcast %20 : vector<2x8x1xf32> to vector<2x8x32xf32>
    %22 = arith.mulf %19, %21 : vector<2x8x32xf32>
    %c0_16 = arith.constant 0 : index
    %c0_17 = arith.constant 0 : index
    %c0_18 = arith.constant 0 : index
    %c0_19 = arith.constant 0 : index
    %23 = vector.load %arg7[%c0_16, %c0_17, %c0_18, %c0_19] : memref<1x2x8x32xf32, #tpu.memory_space<vmem>>, vector<1x2x8x32xf32>
    %24 = vector.shape_cast %23 : vector<1x2x8x32xf32> to vector<2x8x32xf32>
    %25 = vector.shape_cast %22 : vector<2x8x32xf32> to vector<1x2x8x32xf32>
    tpu.vector_store %arg7[%c0_16, %c0_17, %c0_18, %c0_19], %25 {strides = array<i32>} : memref<1x2x8x32xf32, #tpu.memory_space<vmem>>, vector<1x2x8x32xf32>,
    return
  }
  func.func @transform_0(%arg0: i32, %arg1: i32, %arg2: i32) -> (i32, i32, i32, i32) {
    %c0_i32 = arith.constant 0 : i32
    %c0_i32_0 = arith.constant 0 : i32
    return %arg0, %arg1, %arg2, %c0_i32 : i32, i32, i32, i32
  }
  func.func @transform_1(%arg0: i32, %arg1: i32, %arg2: i32) -> (i32, i32, i32, i32) {
    %c0_i32 = arith.constant 0 : i32
    %c0_i32_0 = arith.constant 0 : i32
    %c0_i32_1 = arith.constant 0 : i32
    return %arg0, %arg1, %c0_i32, %c0_i32_0 : i32, i32, i32, i32
  }
  func.func @transform_2(%arg0: i32, %arg1: i32, %arg2: i32) -> (i32, i32, i32, i32) {
    %c0_i32 = arith.constant 0 : i32
    %c0_i32_0 = arith.constant 0 : i32
    %c0_i32_1 = arith.constant 0 : i32
    return %arg0, %arg1, %c0_i32, %c0_i32_0 : i32, i32, i32, i32
  }
  func.func @transform_3(%arg0: i32, %arg1: i32, %arg2: i32) -> (i32, i32) {
    %c0_i32 = arith.constant 0 : i32
    %c0_i32_0 = arith.constant 0 : i32
    %c0_i32_1 = arith.constant 0 : i32
    return %c0_i32, %c0_i32_0 : i32, i32
  }
  func.func @transform_4(%arg0: i32, %arg1: i32, %arg2: i32) -> (i32, i32, i32, i32) {
    %c0_i32 = arith.constant 0 : i32
    %c0_i32_0 = arith.constant 0 : i32
    return %arg0, %arg1, %arg2, %c0_i32 : i32, i32, i32, i32
  }
}

</mosaic_0001>

<bundles_post_ra>
// kernel: tpu_custom_call.1
= control target key start
LH: loop header
LB: loop body
LE: loop exit
PB: predicated region body
PF: predicated region fallthrough
CT: control target
= control target key end

     0   :  { %s1268_s0 = inlined_call_operand.hbm [shape: f32[2,2,8,32], index: 0, kind: input, shape index: {}]   ;;  %s1269_s1 = inlined_call_operand.hbm [shape: f32[2,2,8,32], index: 1, kind: input, shape index: {}]   ;;  %s1270_s2 = inlined_call_operand.hbm [shape: f32[2,2,8,32], index: 2, kind: input, shape index: {}]   ;;  %s1271_s3 = inlined_call_operand.hbm [shape: bf16[8,8], index: 3, kind: input, shape index: {}]   ;;  %s1272_s4 = inlined_call_operand.hbm [shape: f32[2,2,8,32], index: 4, kind: output, shape index: {}]  }
   0x1   :  { %1282 = sst [smem:[#allocation19_spill]] %s1268_s0 }
   0x2   :  { %1283 = sst [smem:[#allocation20_spill]] %s1269_s1 }
   0x3   :  { %1284 = sst [smem:[#allocation21_spill]] %s1271_s3 }
   0x4   :  { %9 = vsyncpa [#allocation3], 0 }
   0x5   :  { %11 = vsyncpa [#allocation3 + $0x1], 0 }
   0x6   :  { %12 = vsyncpa [#allocation6], 0 }
   0x7   :  { %14 = vsyncpa [#allocation6 + $0x1], 0 }
   0x8   :  { %15 = vsyncpa [#allocation9], 0 }
   0x9   :  { %16 = vsyncpa [#allocation4], 0 }
   0xa   :  { %18 = vsyncpa [#allocation4 + $0x1], 0  ;;  %s1058_s15 = smov 0   ;;  %s1060_s16 = smov 0  }
   0xb   :  { %s1062_s17 = smov 0   ;;  %s1064_s18 = smov 0  }
   0xc   :  { %s1066_s19 = smov 0   ;;  %s1068_s20 = smov 0  }
   0xd LB: > { %1285 = sst [smem:[#allocation15_spill]] %s1022_s19  ;;  %s43_s21 = sadd.s32 1, %s1022_s19  ;;  %s1026_s20 = sphi %s1068_s20, %s24_s20   ;;  %s1022_s19 = sphi %s1066_s19, %s1303_s19   ;;  %s1018_s18 = sphi %s1064_s18, %s1302_s18   ;;  %s1014_s17 = sphi %s1062_s17, %s1306_s17   ;;  %s1010_s16 = sphi %s1060_s16, %s1305_s16   ;;  %s1006_s15 = sphi %s1058_s15, %s1304_s15  }
   0xe   : > { %1286 = sst [smem:[#allocation16_spill]] %s1026_s20  ;;  %s54_s22 = sadd.s32 1, %s1014_s17 }
   0xf   : > { %p45_p0 = scmp.ge.s32.totalorder %s43_s21, 2  ;;  %p61_p1 = scmp.ne.s32.totalorder %s1014_s17, %s1010_s16 }
  0x10   : > { %p62_p2 = scmp.eq.s32.totalorder %s1026_s20, 0  ;;  %p690_p3 = scmp.ge.s32.totalorder %s1026_s20, 2 }
  0x11   : > { %s1308_s21 = smov (%p45_p0, %s43_s21), 0  ;;  %p752_p5 = scmp.lt.s32.totalorder %s1026_s20, 2 }
  0x12   : > { %1287 = sst [smem:[#allocation17_spill]] %s1308_s21  ;;  %p63_p4 = por %p62_p2, %p61_p1 }
  0x13   : > { %s47_s23 = ssub.s32 %s1022_s19, %s1308_s21  ;;  %s1277_s24 = sand.u32 1, %s1014_s17  }
  0x14   : > { %p52_p6 = scmp.eq.s32.totalorder %s47_s23, 0  ;;  %s1105_s25 = sshll.u32 %s1277_s24, 4 }
  0x15   : > { %s1108_s26 = sshll.u32 %s1022_s19, 4  ;;  %p1110_p7 = pnand %p752_p5, %p63_p4 }
  0x16   : > { %s1115_s28 = scalar_select %p52_p6, %s1014_s17, %s54_s22  }
  0x17   : > { %s235_s29 = sand.u32 1, %s1026_s20   ;;  %s1290_s1 = sld [smem:[#allocation20_spill]] }
  0x18   : > { %1289 = sst [smem:[#allocation18_spill]] %s1115_s28  ;;  %s239_s7 = scalar_lea.vmem [#allocation5], %s1105_s25 }
  0x19   : > { %s249_s8 = sshll.u32 %s239_s7, 4  ;;  %s1123_s10 = scalar_lea.sflag [#allocation6], %s235_s29  ;;  %s250_s8 = int_to_ptr.vmem [resolvable:$true] %s249_s8 }
  0x1a   : > { %s1273_s11 = smov 128   ;;  %s1275_s12 = smov 8  }
  0x1b   : > { %s1132_s13 = sadd.s32 4294967295, %s1026_s20   ;;  %s687_s14 = sadd.s32 4294967294, %s1026_s20  }
  0x1c   : > { %p67_p8 = scmp.ne.s32.totalorder %s1010_s16, %s1006_s15  ;;  %p68_p9 = scmp.eq.s32.totalorder %s1132_s13, 0 }
  0x1d   : > { %s246_s6 = scalar_lea.hbm %s1290_s1, %s1108_s26  ;;  %p172_p10 = scmp.eq.s32.totalorder %s1132_s13, 1 }
  0x1e   : > { %s247_s9 = sshll.u32 %s246_s6, 4  ;;  %p178_p11 = scmp.eq.s32.totalorder %s687_s14, 1  ;;  %s248_s9 = int_to_ptr.hbm [resolvable:$true] %s247_s9 }
  0x1f   : > { %743 = dma.hbm_to_vmem [thread:$0]  (!%p1110_p7), %s248_s9, 256, %s250_s8, %s1123_s10, %s1273_s11, %s1273_s11, %s1275_s12  }
  0x20   : > { %p688_p12 = scmp.ge.s32.totalorder %s1026_s20, 1  ;;  %p1142_p13 = por %p68_p9, %p67_p8 }
  0x21   : > { %p1149_p0 = por %p172_p10, %p61_p1  ;;  %p1153_p2 = por %p178_p11, %p67_p8 }
  0x22   : > { %p185_p4 = scmp.lt.s32.totalorder %s1026_s20, 3  ;;  %s1294_s3 = sld [smem:[#allocation21_spill]] }
  0x23   : > { %s1030_s8 = smov [#allocation8]   ;;  %s1296_s0 = sld [smem:[#allocation19_spill]] }
  0x24   : > { %p1161_p5 = pnand %p688_p12, %p185_p4  ;;  %s199_s9 = sshll.u32 %s1030_s8, 4  ;;  %s200_s9 = int_to_ptr.vmem [resolvable:$true] %s199_s9 }
  0x25   : > { %s214_s12 = scalar_lea.vmem [#allocation2], %s1105_s25  ;;  %s1297_s1 = sand.u32 1, %s1014_s17  }
  0x26   : > { %p733_p1 = pneg %p1161_p5  ;;  %s225_s24 = sshll.u32 %s214_s12, 4  ;;  %s226_s24 = int_to_ptr.vmem [resolvable:$true] %s225_s24 }
  0x27   : > { %s1298_s21 = smov 8   ;;  %s1299_s8 = smov 128  }
  0x28   : > { %s197_s6 = sshll.u32 %s1294_s3, 4  ;;  %p734_p6 = pnand %p733_p1, %p68_p9  ;;  %s198_s6 = int_to_ptr.hbm [resolvable:$true] %s197_s6 }
  0x29   : > { %s222_s5 = scalar_lea.hbm %s1296_s0, %s1108_s26  ;;  %s211_s3 = scalar_lea.sflag [#allocation3], %s1297_s1 }
  0x2a   : > { %s223_s11 = sshll.u32 %s222_s5, 4  ;;  %s270_s14 = scalar_lea.hbm %s1270_s2, %s1108_s26  ;;  %s224_s11 = int_to_ptr.hbm [resolvable:$true] %s223_s11 }
  0x2b   : > { %736 = dma.hbm_to_vmem [thread:$0]  (!%p734_p6), %s198_s6, 64, %s200_s9, [#allocation9]  }
  0x2c   : > { %740 = dma.hbm_to_vmem [thread:$0]  (!%p1110_p7), %s224_s11, 256, %s226_s24, %s211_s3, %s1299_s8, %s1299_s8, %s1298_s21  }
  0x2d   : > { %s263_s30 = scalar_lea.vmem [#allocation7], %s1105_s25  ;;  %s271_s0 = sshll.u32 %s270_s14, 4  ;;  %s272_s0 = int_to_ptr.hbm [resolvable:$true] %s271_s0 }
  0x2e   : > { %s273_s20 = sshll.u32 %s263_s30, 4  ;;  %285 = sbr.rel (%p1161_p5) target bundleno = 465 (0x1d1), region = 36  ;;  %s274_s20 = int_to_ptr.vmem [resolvable:$true] %s273_s20 }
  0x2f   : > { %746 = dma.hbm_to_vmem [thread:$0]  (!%p1110_p7), %s272_s0, 256, %s274_s20, %s1123_s10, %s1299_s8, %s1299_s8, %s1298_s21  }
  0x30   : > { %s1195_s1 = sand.u32 (!%p1161_p5), 1, %s1010_s16  }
  0x31   : > { %s1198_s3 = sshll.u32 (!%p1161_p5), %s1195_s1, 4  ;;  %s288_s19 = scalar_lea.sflag (!%p1161_p5), [#allocation3], %s1195_s1 }
  0x32   : > { %s291_s24 = scalar_lea.vmem (!%p1161_p5), [#allocation2], %s1198_s3 }
  0x33   : > { %989 = dma.done.wait (%p1142_p13), %s288_s19, 256  }
  0x34   : > { %991 = vsyncadd (%p1142_p13), %s288_s19, 4294967040  ;;  %s297_s0 = sand.u32 1, %s1132_s13   ;;  %s301_s21 = scalar_lea.vmem [#allocation5], %s1198_s3 }
  0x35   : > { %s298_s20 = scalar_lea.sflag [#allocation6], %s297_s0 }
  0x36   : > { %993 = dma.done.wait (%p1142_p13), %s298_s20, 512  }
  0x37   : > { %995 = vsyncadd (%p1142_p13), %s298_s20, 4294966784  ;;  %s311_s25 = scalar_lea.vmem [#allocation7], %s1198_s3 }
  0x38   : > { %997 = dma.done.wait (%p68_p9), [#allocation9], 64  }
  0x39   : > { %999 = vsyncadd (%p68_p9), [#allocation9], 4294967232  ;;  %vm364_vm0 = vcmask 261120   ;;  %v358_v0 = vld [vmem:[%s301_s21] sm:$0xff]  ;;  %v359_v1 = vld [vmem:[%s301_s21 + $0x8] sm:$0xff]  ;;  %vm419_vm1 = vcmask 64512  }
  0x3a   : > { %706 = vmatpush.xpose.msk.msra.mxu0 %vm364_vm0, %v358_v0  ;;  %v356_v2 = vld [vmem:[%s291_s24] sm:$0xff]  ;;  %708 = vmatpush.xpose.msk.msra.mxu1 %vm364_vm0, %v359_v1  ;;  %v357_v3 = vld [vmem:[%s291_s24 + $0x8] sm:$0xff]  ;;  %s720_s26 = sshll.u32 %s1018_s18, 4  ;;  %s351_s11 = scalar_lea.vmem [#allocation10], %s1198_s3 }
  0x3b   : > { %v362_v4 = vld [vmem:[#allocation8] sm:$0xf]  ;;  %v361_v13 = vld [vmem:[%s311_s25 + $0x8] sm:$0xff]  ;;  %s531_s10 = scalar_lea.hbm %s1272_s4, %s720_s26  ;;  %s532_s12 = sshll.u32 %s351_s11, 4  ;;  %s533_s12 = int_to_ptr.vmem [resolvable:$true] %s532_s12 }
  0x3c   : > { %v363_v5 = vunpack.c.l.bf16 %v362_v4  ;;  %v360_v12 = vld [vmem:[%s311_s25] sm:$0xff]  ;;  %479 = vmatpush.msra.mxu3 %v361_v13  ;;  %s534_s18 = sshll.u32 %s531_s10, 4  ;;  %s517_s13 = scalar_lea.sflag [#allocation4], %s1195_s1  ;;  %s535_s18 = int_to_ptr.hbm [resolvable:$true] %s534_s18 }
  0x3d   : > { %707 = vmatmul.msk.f32.vlgmr.msra.gmra.mxu0 %vm364_vm0, %v356_v2  ;;  %709 = vmatmul.msk.f32.vlgmr.msra.gmra.mxu1 %vm364_vm0, %v357_v3  ;;  %s950_s22 = sshra.s32 %s535_s18, 4  ;;  %s956_s5 = scalar_lea.hbm %s1272_s4, 32  ;;  %s951_s22 = int_to_ptr.hbm [resolvable:$true] %s950_s22 }
  0x3e   : > { %456 = vmatpush.msra.mxu2 %v360_v12  ;;  %s952_s6 = scalar_lea.hbm %s951_s22, 16  ;;  %p957_p10 = scmp.lt.s32.totalorder %s951_s22, %s1272_s4 }
  0x3f   : > { %p953_p7 = scmp.ne.s32.totalorder %s951_s22, %s952_s6  ;;  %p958_p11 = scmp.lt.s32.totalorder %s956_s5, %s952_s6 }
  0x41   : > { %p954_p8 = pnand %p953_p7, %p1149_p0  ;;  %p959_p12 = por %p958_p11, %p957_p10 }
  0x43   : > { %p955_p9 = pneg %p954_p8 }
  0x45   : > { %p960_p13 = pnand %p959_p12, %p955_p9 }
  0xba   : > { %v388_v6 = vpop.f32.mrf.mxu0  ;;  %v414_v8 = vpop.f32.mrf.mxu1 }
  0xbb   : > { %v417_v7 = vmul.f32 %v388_v6, %v363_v5  ;;  %v418_v10 = vmul.f32 %v414_v8, %v363_v5 }
  0xbd   : > { %v420_v9 = vsel %vm419_vm1, %v417_v7, -inf  ;;  %v423_v11 = vsel %vm419_vm1, %v418_v10, -inf }
  0xbe   : > { %421 = vmax.xlane.f32.xlu0 %v420_v9 }
  0xc6   : > { %424 = vmax.xlane.f32.xlu0 %v423_v11 }
 0x131   : > { %v422_v14 = vpop.xlane.xlu0 %421 }
 0x132   : > { %v426_v15 = vsub.f32 %v417_v7, %v422_v14 }
 0x134   : > { %v428_v16 = vmul.f32 1.442695, %v426_v15 }
 0x136   : > { %808 = vpow2.f32 %v428_v16 }
 0x139   : > { %v425_v17 = vpop.xlane.xlu0 %424 }
 0x13a   : > { %v427_v18 = vsub.f32 %v418_v10, %v425_v17 }
 0x13c   : > { %v809_v19 = vpop.eup %808  ;;  %v430_v20 = vmul.f32 1.442695, %v427_v18 }
 0x13d   : > { %710 = vmatmul.msk.f32.vlgmr.msra.gmra.mxu2 %vm419_vm1, %v809_v19  ;;  %v432_v21 = vsel %vm419_vm1, %v809_v19, 0.0 }
 0x13e   : > { %810 = vpow2.f32 %v430_v20  ;;  %433 = vadd.xlane.f32.xlu1 %v432_v21 }
 0x144   : > { %v811_v22 = vpop.eup %810 }
 0x145   : > { %711 = vmatmul.msk.f32.vlgmr.msra.gmra.mxu3 %vm419_vm1, %v811_v22  ;;  %v435_v23 = vsel %vm419_vm1, %v811_v22, 0.0 }
 0x146   : > { %436 = vadd.xlane.f32.xlu1 %v435_v23 }
 0x1b1   : > { %v434_v24 = vpop.xlane.xlu1 %433 }
 0x1b2   : > { %812 = vrcp.f32 %v434_v24  ;;  %v495_v29 = vand.u32 2147483648, %v434_v24  ;;  %v493_v31 = vand.u32 2147483647, %v434_v24  ;;  %vm489_vm3 = vweird.f32 %v434_v24 }
 0x1b4   : > { %v496_v34 = vor.u32 1.1754944e-38, %v495_v29  ;;  %vm494_vm5 = vcmp.eq.f32.partialorder %v493_v31, 8.507059e+37 }
 0x1b8   : > { %v813_v25 = vpop.eup %812 }
 0x1b9   : > { %v485_v26 = vmul.f32 %v813_v25, %v434_v24  ;;  %v437_v27 = vpop.xlane.xlu1 %436  ;;  %vm490_vm2 = vweird.f32 %v813_v25 }
 0x1ba   : > { %814 = vrcp.f32 %v437_v27  ;;  %vm491_vm4 = vmor %vm489_vm3, %vm490_vm2  ;;  %v509_v41 = vand.u32 2147483648, %v437_v27  ;;  %v507_v43 = vand.u32 2147483647, %v437_v27  ;;  %vm503_vm7 = vweird.f32 %v437_v27 }
 0x1bb   : > { %v486_v28 = vsub.f32 1.0, %v485_v26 }
 0x1bc   : > { %v510_v45 = vor.u32 1.1754944e-38, %v509_v41  ;;  %vm508_vm9 = vcmp.eq.f32.partialorder %v507_v43, 8.507059e+37 }
 0x1bd   : > { %v487_v30 = vmul.f32 %v813_v25, %v486_v28 }
 0x1bf   : > { %v488_v32 = vadd.f32 %v813_v25, %v487_v30 }
 0x1c0   : > { %v815_v33 = vpop.eup %814  ;;  %v458_v37 = vpop.f32.mrf.mxu2 }
 0x1c1   : > { %v499_v35 = vmul.f32 %v815_v33, %v437_v27  ;;  %v492_v36 = vsel %vm491_vm4, %v813_v25, %v488_v32  ;;  %vm504_vm6 = vweird.f32 %v815_v33 }
 0x1c2   : > { %v497_v38 = vsel %vm494_vm5, %v496_v34, %v492_v36  ;;  %vm505_vm8 = vmor %vm503_vm7, %vm504_vm6 }
 0x1c3   : > { %v500_v39 = vsub.f32 1.0, %v499_v35  ;;  %v512_v40 = vmul.f32 %v497_v38, %v458_v37 }
 0x1c5   : > { %v501_v42 = vmul.f32 %v815_v33, %v500_v39  ;;  %514 = vst.msk [vmem:[%s351_s11] sm:$0xff] %vm364_vm0, %v512_v40 }
 0x1c7   : > { %v502_v44 = vadd.f32 %v815_v33, %v501_v42 }
 0x1c8   : > { %v481_v47 = vpop.f32.mrf.mxu3 }
 0x1c9   : > { %v506_v46 = vsel %vm505_vm8, %v815_v33, %v502_v44 }
 0x1ca   : > { %v511_v48 = vsel %vm508_vm9, %v510_v45, %v506_v46 }
 0x1cb   : > { %v513_v49 = vmul.f32 %v511_v48, %v481_v47 }
 0x1cd   : > { %515 = vst.msk [vmem:[%s351_s11 + $0x8] sm:$0xff] %vm364_vm0, %v513_v49 }
 0x1ce   : > { %963 = shalt.err (!%p960_p13)
}
 0x1cf   : > { %s1031_s30 = smov 128   ;;  %s1032_s1 = smov 8  }
 0x1d0   : > { %731 = dma.vmem_to_hbm [thread:$0]  (%p1149_p0), %s533_s12, 256, %s535_s18, %s517_s13, %s1031_s30, %s1031_s30, %s1032_s1  }
 0x1d1 PF: > { %s1300_s3 = sld [smem:[#allocation16_spill]]  ;;  %s549_s19 = sand.u32 1, %s1006_s15  }
 0x1d2   : > { %p748_p4 = pnand %p690_p3, %p1153_p2  ;;  %s550_s24 = scalar_lea.sflag [#allocation4], %s549_s19 }
 0x1d4   : > { %p749_p5 = pneg %p748_p4 }
 0x1d6   : > { %1001 = dma.done.wait (%p749_p5), %s550_s24, 256  }
 0x1d7   : > { %1003 = vsyncadd (%p749_p5), %s550_s24, 4294967040  ;;  %s24_s20 = sadd.s32 1, %s1300_s3   ;;  %s1301_s0 = sld [smem:[#allocation18_spill]] }
 0x1d8   : > { %p21_p1 = scmp.ge.s32.totalorder %s24_s20, 4   ;;  %s1302_s18 = sld [smem:[#allocation15_spill]] }
 0x1d9   : > { %s1303_s19 = sld [smem:[#allocation17_spill]]  ;;  %s1304_s15 = smov %s1010_s16 }
 0x1da   : > { %s1305_s16 = smov %s1014_s17  ;;  %23 = sbr.rel (!%p21_p1) target bundleno = 13 (0xd), region = 109 }
 0x1dd   : > { %s1306_s17 = smov %s1301_s0 }
 0x1df   :  { %556 = vsyncpa [#allocation3], 1 }
 0x1e0   :  { %558 = vsyncpa [#allocation3 + $0x1], 1 }
 0x1e1   :  { %559 = vsyncpa [#allocation6], 1 }
 0x1e2   :  { %561 = vsyncpa [#allocation6 + $0x1], 1 }
 0x1e3   :  { %562 = vsyncpa [#allocation9], 1 }
 0x1e4   :  { %563 = vsyncpa [#allocation4], 1 }
 0x1e5   :  { %565 = vsyncpa [#allocation4 + $0x1], 1 }

</bundles_post_ra>
